<compile_context>
chip_gen: v6e
topology: v6e:2x2x1
jax: 0.10.0
libtpu: 0.0.40
codegen_flags: <defaults>
</compile_context>

<pallas_src>
import math
import functools

import jax
import jax.numpy as jnp
from jax import lax
from jax.experimental import pallas as pl
from jax.experimental.pallas import tpu as pltpu


# ---------------------------------------------------------------------------
# Kernels
# ---------------------------------------------------------------------------

def _kernel_transposed(*refs, consts, has_bias):
    """Lane-dense-batch layout.  x_ref/o_ref: (D*MUL, TB); bias_ref: (len0*MUL, 1).

    Each lane owns one batch element, so the per-group squared-sum is a
    cross-sublane reduce and every store is an unmasked lane-dense vst.
    NOTE: on a partial last batch tile the padded lanes feed garbage into
    rsqrt (NaN/Inf); Pallas discards those lanes on store, so this is benign —
    do not start accumulating across tiles without masking them first.
    """
    if has_bias:
        x_ref, bias_ref, o_ref = refs
    else:
        x_ref, o_ref = refs
        bias_ref = None

    x = x_ref[...]                                        # (DM, TB), native dtype
    start = 0
    for gi, (rows, c1, c2) in enumerate(consts):
        blk = x[start:start + rows]                       # leading-axis static slice
        blkf = blk.astype(jnp.float32)
        ssq = jnp.sum(blkf * blkf, axis=0, keepdims=True)             # (1, TB)
        scale = lax.rsqrt(ssq * c1 + c2)                  # constants folded; EUP rsqrt
        scaled = blk * scale.astype(blk.dtype)            # multiply in input dtype
        if has_bias and gi == 0:
            # bias is sublane-resident (len0*MUL, 1); broadcasting along the
            # minor (lane/batch) axis is the cheap broadcast direction.
            scaled = scaled + bias_ref[...].astype(scaled.dtype)
        o_ref[start:start + rows] = scaled.astype(o_ref.dtype)
        start += rows


def _kernel_flat(*refs, consts, has_bias):
    """No-transpose layout.  x_ref/o_ref: (TB, D*MUL); gmask_ref: (num_l, D*MUL)
    one-hot group membership (f32); bias_ref: (1, D*MUL).

    Batch rides the sublane axis, so the input keeps its natural HBM layout
    (no wrapper transposes -> no extra HBM passes).  Per-group reduction is a
    cross-lane reduce (XLU); the group membership masks arrive as a tiny input
    so no arbitrary dense constants need to live in the kernel.
    Padded rows of a partial last batch tile produce NaN scales that are
    discarded on store (benign).
    """
    if has_bias:
        x_ref, gmask_ref, bias_ref, o_ref = refs
    else:
        x_ref, gmask_ref, o_ref = refs
        bias_ref = None

    x = x_ref[...]                                        # (TB, DM)
    xf = x.astype(jnp.float32)
    sq = xf * xf
    gm = gmask_ref[...]                                   # (num_l, DM) f32 one-hot
    scale_full = None
    for gi, (c1, c2) in enumerate(consts):
        m = gm[gi][None, :]                               # (1, DM)
        ssq = jnp.sum(sq * m, axis=-1, keepdims=True)     # (TB, 1) cross-lane reduce
        s = lax.rsqrt(ssq * c1 + c2)                      # (TB, 1)
        contrib = m * s                                   # (TB, DM)
        scale_full = contrib if scale_full is None else scale_full + contrib
    out = x * scale_full.astype(x.dtype)                  # multiply in input dtype
    if has_bias:
        out = out + bias_ref[...].astype(out.dtype)       # (1, DM) sublane broadcast
    o_ref[...] = out


# ---------------------------------------------------------------------------
# Wrapper helpers
# ---------------------------------------------------------------------------

def _round_up(x, m):
    return (x + m - 1) // m * m


def _device_params():
    """Per-generation tiling knobs:
    (target_tile_bytes, scoped_vmem_default_bytes, vmem_cap_bytes, multi_tc)."""
    kind = ""
    try:
        kind = jax.devices()[0].device_kind.lower()
    except Exception:
        pass
    if ("v5 lite" in kind) or ("v5e" in kind) or ("v5lite" in kind):
        # v5e: 1 TC, 16 MiB scoped-VMEM default (128 MiB physical) -> keep tiles small.
        return 2 << 20, 16 << 20, 100 << 20, False
    if "v7" in kind:
        # v7x: 2 TCs, ~3.2 TB/s HBM, 64 MiB physical VMEM (32 MiB scoped default)
        # -> bigger tiles amortize the ~0.35 us per-step overhead.
        return 5 << 20, 32 << 20, 48 << 20, True
    # v6e (default): 1 TC, 32 MiB scoped default, 128 MiB physical.
    return 3 << 20, 32 << 20, 100 << 20, False


def _choose_tile(B, unit, unit_bytes, target_bytes, multi_tc):
    """Batch-tile size (elements along the batch axis).

    `unit` is the hardware granularity of the tiled axis (128 lanes for the
    transposed layout, sublane-pack for the flat layout).  Single-TC chips
    (v5e/v6e) get the largest tile that meets the byte target — a 1-step grid
    is fine there and extra steps are pure per-step overhead.  Multi-TC chips
    (v7x) keep >= 2 grid steps (even count preferred) so both TensorCores get
    work via the "parallel" grid axis.
    """
    if B <= unit:
        return B                                          # full-dim block is always legal
    max_units = pl.cdiv(B, unit)
    t_units = max(1, int(target_bytes) // max(1, unit_bytes))
    if multi_tc:
        t_units = min(t_units, max(1, max_units // 2))
        n_steps = pl.cdiv(max_units, t_units)
        if n_steps > 1 and n_steps % 2 == 1:              # prefer an even step count
            t_units = max(1, pl.cdiv(max_units, n_steps + 1))
    t_units = min(t_units, max_units)
    tile = t_units * unit
    return B if tile >= B else tile


# Use the no-transpose layout when the flattened feature dim is lane-dense
# enough (>= a few hundred lanes); below that the transposed layout's fully
# lane-dense stores are preferred (override via layout=).
_FLAT_LANE_THRESHOLD = 256


# ---------------------------------------------------------------------------
# Public wrapper
# ---------------------------------------------------------------------------

def so3_layernorm(x, bias, groups, *, eps=1e-5, normalization="std",
                  layout="auto", batch_tile=None):
    """SO3_LayerNorm forward.

    x:      (B, MUL, D), D = sum of group lengths (groups ordered by sorted l,
            each group's channels ordered '(i l)').
    bias:   (MUL, n_irr_l0) or None — added to the l=0 group (torch semantics).
    groups: tuple of (length, l_dim0=2l+1, n_irr) per unique l.
    layout: 'auto' | 'flat' (no-transpose, batch on sublanes) |
            'transposed' (batch on lanes, wrapper transposes).
    """
    if normalization not in ("norm", "component", "std"):
        raise ValueError(f"Invalid normalization: {normalization}")
    B, MUL, D = x.shape
    assert D == sum(g[0] for g in groups)
    num_l = len(groups)
    DM = MUL * D
    itemsize = jnp.dtype(x.dtype).itemsize

    # Fold each group's normalization into scale = rsqrt(ssq * c1 + c2):
    #   norm:      c1 = 1/(MUL*n_irr),  c2 = eps
    #   component: c1 = 1/(MUL*length), c2 = eps
    #   std:       c1 = 1/(MUL*length), c2 = num_l*eps
    # TODO(synk): 'std' folds the uniform balance_degree_weight buffer
    # analytically; a learned/overridden buffer is not supported here.
    consts = []
    for (length, l_dim0, n_irr) in groups:
        if normalization == "norm":
            c1, c2 = 1.0 / (MUL * n_irr), float(eps)
        elif normalization == "component":
            c1, c2 = 1.0 / (MUL * length), float(eps)
        else:  # 'std'
            c1, c2 = 1.0 / (MUL * length), float(num_l * eps)
        consts.append((length, c1, c2))

    has_bias = (bias is not None) and (bias.size > 0)
    if has_bias:
        if groups[0][1] != 1:
            raise ValueError("bias requires the first group to be l=0")
        assert bias.shape == (MUL, groups[0][0])

    if layout == "auto":
        layout = "flat" if DM >= _FLAT_LANE_THRESHOLD else "transposed"

    target_bytes, scoped_default, vmem_cap, multi_tc = _device_params()
    sub = max(1, 4 // max(1, itemsize)) * 8          # sublane packing granularity

    # Advisory hint: the kernel is purely HBM-bandwidth-bound.
    cost = pl.CostEstimate(flops=3 * B * DM, transcendentals=B * num_l,
                           bytes_accessed=2 * B * DM * itemsize)

    if layout == "flat":
        # --- No-transpose layout: x stays (B, MUL*D); batch rides sublanes. ---
        x2 = x.reshape(B, DM)                        # contiguous, free
        tb = batch_tile if batch_tile is not None else _choose_tile(
            B, sub, sub * DM * itemsize, target_bytes, multi_tc)
        nb = pl.cdiv(B, tb)
        tile_bytes = _round_up(tb, sub) * _round_up(DM, 128) * itemsize

        # One-hot group membership over the flattened (m, d) lane index.
        d_idx = jnp.arange(D)
        rows = []
        start = 0
        for (length, _, _) in groups:
            sel = ((d_idx >= start) & (d_idx < start + length)).astype(jnp.float32)
            rows.append(jnp.tile(sel, (MUL,)))       # (MUL*D,)
            start += length
        gmask = jnp.stack(rows, axis=0)              # (num_l, DM)

        x_kw = dict(pipeline_mode=pl.Buffered(3)) if (multi_tc and nb >= 3) else {}
        in_specs = [pl.BlockSpec((tb, DM), lambda b: (b, 0), **x_kw),
                    pl.BlockSpec((num_l, DM), lambda b: (0, 0))]
        args = [x2, gmask]
        if has_bias:
            len0 = groups[0][0]
            bias_full = jnp.zeros((MUL, D), bias.dtype).at[:, :len0].set(bias)
            args.append(bias_full.reshape(1, DM))
            in_specs.append(pl.BlockSpec((1, DM), lambda b: (0, 0)))
        out_specs = pl.BlockSpec((tb, DM), lambda b: (b, 0))
        out_shape = jax.ShapeDtypeStruct((B, DM), x.dtype)
        kernel = functools.partial(
            _kernel_flat,
            consts=tuple((c1, c2) for _, c1, c2 in consts),
            has_bias=has_bias)
        post = lambda o: o.reshape(B, MUL, D)

    elif layout == "transposed":
        # --- Lane-dense-batch layout: (D*MUL, B) with the (D, MUL) axes collapsed
        # into one un-tiled leading axis (2-D blocks -> no bf16 sublane padding
        # per D-slice).  NOTE: the two wrapper transposes add ~2 extra HBM
        # passes; prefer 'flat' (or keep activations transposed across layers)
        # when MUL*D is lane-dense enough.
        x_t = jnp.transpose(x, (2, 1, 0)).reshape(DM, B)
        tb = batch_tile if batch_tile is not None else _choose_tile(
            B, 128, 128 * DM * itemsize, target_bytes, multi_tc)
        nb = pl.cdiv(B, tb)
        tile_bytes = _round_up(DM, sub) * _round_up(tb, 128) * itemsize

        x_kw = dict(pipeline_mode=pl.Buffered(3)) if (multi_tc and nb >= 3) else {}
        in_specs = [pl.BlockSpec((DM, tb), lambda b: (0, b), **x_kw)]
        args = [x_t]
        if has_bias:
            len0 = groups[0][0]
            # row j*MUL + m of x_t (d=j, m) gets bias[m, j]
            bias_t = jnp.transpose(bias, (1, 0)).reshape(len0 * MUL, 1)
            args.append(bias_t)
            in_specs.append(pl.BlockSpec((len0 * MUL, 1), lambda b: (0, 0)))
        out_specs = pl.BlockSpec((DM, tb), lambda b: (0, b))
        out_shape = jax.ShapeDtypeStruct((DM, B), x.dtype)
        kernel = functools.partial(
            _kernel_transposed,
            consts=tuple((length * MUL, c1, c2) for length, c1, c2 in consts),
            has_bias=has_bias)
        post = lambda o: jnp.transpose(o.reshape(D, MUL, B), (2, 1, 0))

    else:
        raise ValueError(f"unknown layout: {layout}")

    # Explicit scoped-VMEM limit whenever the double-buffered in+out footprint
    # would exceed this generation's default (v5e 16 MiB / v6e,v7x 32 MiB).
    vmem_needed = 4 * tile_bytes + (2 << 20)
    vmem_limit = min(vmem_cap, vmem_needed) if vmem_needed > scoped_default else None
    # TODO(synk): for very large D*MUL (the un-tiled axis) on v7x (64 MiB VMEM),
    # tile that axis at group boundaries with a second 'arbitrary' grid axis
    # instead of only raising vmem_limit_bytes.

    out = pl.pallas_call(
        kernel,
        out_shape=out_shape,
        grid_spec=pltpu.PrefetchScalarGridSpec(
            num_scalar_prefetch=0,
            grid=(nb,),
            in_specs=in_specs,
            out_specs=out_specs),
        compiler_params=pltpu.CompilerParams(
            dimension_semantics=("parallel",),
            vmem_limit_bytes=vmem_limit),
        cost_estimate=cost,
    )(*args)
    return post(out)


# ---------------------------------------------------------------------------
# Pure-JAX reference (transcription of the torch forward) + test harness
# ---------------------------------------------------------------------------

def _reference(x, bias, groups, eps, normalization="std"):
    B, MUL, _ = x.shape
    num_l = len(groups)
    l_dim_norm = 1.0 / math.sqrt(num_l) if normalization == "std" else 1.0
    outs = []
    start = 0
    for (length, l_dim0, n_irr) in groups:
        blk = x[:, :, start:start + length]
        # Rearrange 'b m (i l) -> b l (m i)'
        feat = blk.reshape(B, MUL, n_irr, l_dim0).transpose(0, 3, 1, 2)
        feat = feat.reshape(B, l_dim0, MUL * n_irr)
        if normalization == "norm":
            fn = (feat ** 2).sum(axis=1, keepdims=True)
        elif normalization == "component":
            fn = (feat ** 2).mean(axis=1, keepdims=True)
        else:  # 'std'
            fn = feat ** 2
            w = jnp.full((l_dim0, 1), 1.0 / (l_dim0 * num_l), dtype=x.dtype)
            fn = jnp.einsum("blc,la->bac", fn, w)
        fn = jnp.mean(fn, axis=2, keepdims=True)
        fn = (fn + eps) ** -0.5 * l_dim_norm
        feat = feat * fn
        # Rearrange 'b l (m i) -> b m (i l)'
        feat = feat.reshape(B, l_dim0, MUL, n_irr).transpose(0, 2, 3, 1)
        feat = feat.reshape(B, MUL, n_irr * l_dim0)
        outs.append(feat)
        start += length
    out = jnp.concatenate(outs, axis=-1)
    if bias is not None:
        out = out.at[:, :, :groups[0][0]].add(bias[None])
    return out


def _groups_from_irreps(irreps):
    """irreps: list of (mul, l) -> tuple of (length, l_dim0, n_irr) per unique l."""
    ls = sorted(set(l for _, l in irreps))
    groups = []
    for l in ls:
        n_irr = sum(1 for _, ll in irreps if ll == l)
        l_dim0 = 2 * l + 1
        groups.append((n_irr * l_dim0, l_dim0, n_irr))
    return tuple(groups)


if __name__ == "__main__":
    eps = 1e-5
    key = jax.random.PRNGKey(0)

    # ---- case 1: '8x0e + 8x0e + 8x1o', f32, bias, 'std' (transposed layout) ----
    MUL = 8
    irreps = [(MUL, 0), (MUL, 0), (MUL, 1)]
    groups = _groups_from_irreps(irreps)            # ((2, 1, 2), (3, 3, 1))
    D = sum(g[0] for g in groups)                   # 5
    B = 512
    k1, k2, key = jax.random.split(key, 3)
    x = jax.random.normal(k1, (B, MUL, D), dtype=jnp.float32)
    bias = 0.1 * jax.random.normal(k2, (MUL, groups[0][0]), dtype=jnp.float32)

    out = jax.block_until_ready(so3_layernorm(x, bias, groups, eps=eps))
    ref = _reference(x, bias, groups, eps, "std")
    assert out.shape == x.shape
    assert jnp.allclose(out, ref, atol=1e-5, rtol=1e-5), "std mismatch vs reference"

    # Same case forced through the no-transpose ('flat') layout.
    out_f = jax.block_until_ready(so3_layernorm(x, bias, groups, eps=eps, layout="flat"))
    assert jnp.allclose(out_f, ref, atol=1e-5, rtol=1e-5), "flat-layout mismatch"

    # Bias-less 'component' path (no-bias kernel signature).
    out_c = jax.block_until_ready(
        so3_layernorm(x, None, groups, eps=eps, normalization="component"))
    ref_c = _reference(x, None, groups, eps, "component")
    assert jnp.allclose(out_c, ref_c, atol=1e-5, rtol=1e-5), "component mismatch"

    # ---- case 2: '32x0e + 32x1o + 32x2e', bf16, bias, 'std' -----------------
    # MUL*D = 288 >= 256 -> auto-selects the no-transpose layout; locks the
    # bf16 tolerance (scale/bias are cast to the input dtype, like the module).
    MUL2 = 32
    irreps2 = [(MUL2, 0), (MUL2, 1), (MUL2, 2)]
    groups2 = _groups_from_irreps(irreps2)          # ((1,1,1), (3,3,1), (5,5,1))
    D2 = sum(g[0] for g in groups2)                 # 9
    B2 = 256
    k3, k4, key = jax.random.split(key, 3)
    x2 = jax.random.normal(k3, (B2, MUL2, D2), dtype=jnp.float32).astype(jnp.bfloat16)
    bias2 = (0.1 * jax.random.normal(k4, (MUL2, groups2[0][0]),
                                     dtype=jnp.float32)).astype(jnp.bfloat16)
    out2 = jax.block_until_ready(so3_layernorm(x2, bias2, groups2, eps=eps))
    ref2 = _reference(x2.astype(jnp.float32), bias2.astype(jnp.float32),
                      groups2, eps, "std")
    assert out2.dtype == jnp.bfloat16
    assert jnp.allclose(out2.astype(jnp.float32), ref2, atol=5e-2, rtol=5e-2), \
        "bf16 mismatch vs f32 reference"

    # TODO(synk): the 2-D input path (len(orig_shape)==2 unsqueeze/reshape) is
    # wrapper-level glue and is not implemented here.
    print("KERNEL_OK")
</pallas_src>

<mosaic_0001>
module attributes {stable_mosaic.version = 11 : i64} {
  func.func @_kernel_transposed(%arg0: i32, %arg1: memref<40x512xf32, #tpu.memory_space<vmem>>, %arg2: memref<16x1xf32, #tpu.memory_space<vmem>>, %arg3: memref<40x512xf32, #tpu.memory_space<vmem>>) attributes {dimension_semantics = [#tpu.dimension_semantics<parallel>], iteration_bounds = array<i64: 1>, scalar_prefetch = 0 : i64, scratch_operands = 0 : i64, tpu.core_type = #tpu.core_type<tc>, window_params = [{transform_indices = @transform_0, window_bounds = array<i64: 40, 512>}, {pipeline_mode = #tpu.pipeline_mode<synchronous>, transform_indices = @transform_1, window_bounds = array<i64: 16, 1>}, {transform_indices = @transform_2, window_bounds = array<i64: 40, 512>}]} {
    %c0 = arith.constant 0 : index
    %c0_0 = arith.constant 0 : index
    %0 = vector.load %arg1[%c0, %c0_0] : memref<40x512xf32, #tpu.memory_space<vmem>>, vector<40x512xf32>
    %1 = vector.extract_strided_slice %0 {offsets = [0, 0], sizes = [16, 512], strides = [1, 1]} : vector<40x512xf32> to vector<16x512xf32>
    %2 = arith.mulf %1, %1 : vector<16x512xf32>
    %cst = arith.constant dense<0.000000e+00> : vector<512xf32>
    %3 = vector.multi_reduction <add>, %2, %cst [0] : vector<16x512xf32> to vector<512xf32>
    %4 = vector.shape_cast %3 : vector<512xf32> to vector<1x512xf32>
    %cst_1 = arith.constant 6.250000e-02 : f32
    %5 = vector.broadcast %cst_1 : f32 to vector<1x512xf32>
    %6 = arith.mulf %4, %5 : vector<1x512xf32>
    %cst_2 = arith.constant 2.000000e-05 : f32
    %7 = vector.broadcast %cst_2 : f32 to vector<1x512xf32>
    %8 = arith.addf %6, %7 : vector<1x512xf32>
    %9 = math.rsqrt %8 : vector<1x512xf32>
    %10 = vector.broadcast %9 : vector<1x512xf32> to vector<16x512xf32>
    %11 = arith.mulf %1, %10 : vector<16x512xf32>
    %c0_3 = arith.constant 0 : index
    %c0_4 = arith.constant 0 : index
    %12 = vector.load %arg2[%c0_3, %c0_4] : memref<16x1xf32, #tpu.memory_space<vmem>>, vector<16x1xf32>
    %13 = vector.broadcast %12 : vector<16x1xf32> to vector<16x512xf32>
    %14 = arith.addf %11, %13 : vector<16x512xf32>
    %c0_5 = arith.constant 0 : index
    %c0_6 = arith.constant 0 : index
    %15 = vector.load %arg3[%c0_5, %c0_6] : memref<40x512xf32, #tpu.memory_space<vmem>>, vector<16x512xf32>
    tpu.vector_store %arg3[%c0_5, %c0_6], %14 {strides = array<i32>} : memref<40x512xf32, #tpu.memory_space<vmem>>, vector<16x512xf32>,
    %16 = vector.extract_strided_slice %0 {offsets = [16, 0], sizes = [24, 512], strides = [1, 1]} : vector<40x512xf32> to vector<24x512xf32>
    %17 = arith.mulf %16, %16 : vector<24x512xf32>
    %cst_7 = arith.constant dense<0.000000e+00> : vector<512xf32>
    %18 = vector.multi_reduction <add>, %17, %cst_7 [0] : vector<24x512xf32> to vector<512xf32>
    %19 = vector.shape_cast %18 : vector<512xf32> to vector<1x512xf32>
    %cst_8 = arith.constant 0.0416666679 : f32
    %20 = vector.broadcast %cst_8 : f32 to vector<1x512xf32>
    %21 = arith.mulf %19, %20 : vector<1x512xf32>
    %cst_9 = arith.constant 2.000000e-05 : f32
    %22 = vector.broadcast %cst_9 : f32 to vector<1x512xf32>
    %23 = arith.addf %21, %22 : vector<1x512xf32>
    %24 = math.rsqrt %23 : vector<1x512xf32>
    %25 = vector.broadcast %24 : vector<1x512xf32> to vector<24x512xf32>
    %26 = arith.mulf %16, %25 : vector<24x512xf32>
    %c16 = arith.constant 16 : index
    %c0_10 = arith.constant 0 : index
    %27 = vector.load %arg3[%c16, %c0_10] : memref<40x512xf32, #tpu.memory_space<vmem>>, vector<24x512xf32>
    tpu.vector_store %arg3[%c16, %c0_10], %26 {strides = array<i32>} : memref<40x512xf32, #tpu.memory_space<vmem>>, vector<24x512xf32>,
    return
  }
  func.func @transform_0(%arg0: i32) -> (i32, i32) {
    %c0_i32 = arith.constant 0 : i32
    %c0_i32_0 = arith.constant 0 : i32
    return %c0_i32, %arg0 : i32, i32
  }
  func.func @transform_1(%arg0: i32) -> (i32, i32) {
    %c0_i32 = arith.constant 0 : i32
    %c0_i32_0 = arith.constant 0 : i32
    %c0_i32_1 = arith.constant 0 : i32
    return %c0_i32, %c0_i32_0 : i32, i32
  }
  func.func @transform_2(%arg0: i32) -> (i32, i32) {
    %c0_i32 = arith.constant 0 : i32
    %c0_i32_0 = arith.constant 0 : i32
    return %c0_i32, %arg0 : i32, i32
  }
}

</mosaic_0001>

<bundles_post_ra>
// kernel: tpu_custom_call.1
= control target key start
LH: loop header
LB: loop body
LE: loop exit
PB: predicated region body
PF: predicated region fallthrough
CT: control target
= control target key end

     0   :  { %7 = vsyncpa [#allocation3], 0  ;;  %s401_s0 = inlined_call_operand.hbm [shape: f32[40,512], index: 0, kind: input, shape index: {}]   ;;  %s402_s1 = inlined_call_operand.vmem [shape: f32[16,1], index: 1, kind: input, shape index: {}]   ;;  %s403_s2 = inlined_call_operand.hbm [shape: f32[40,512], index: 2, kind: output, shape index: {}]  }
   0x1   :  { %8 = vsyncpa [#allocation4], 0  ;;  %s293_s9 = smov [#allocation2]  }
   0x2   :  { %s14_s10 = sshll.u32 %s293_s9, 4  ;;  %s15_s10 = int_to_ptr.vmem [resolvable:$true] %s14_s10 }
   0x3   :  { %s257_s11 = scalar_lea.vmem %s15_s10, 2560  ;;  %p262_p1 = scmp.lt.s32.totalorder %s15_s10, %s15_s10 }
   0x4   :  { %p258_p0 = scmp.ne.s32.totalorder %s15_s10, %s257_s11  ;;  %p263_p2 = scmp.lt.s32.totalorder %s257_s11, %s257_s11 }
   0x6   :  { %p264_p3 = por %p263_p2, %p262_p1 }
   0x8   :  { %p265_p4 = pnand %p264_p3, %p258_p0 }
   0xa   :  { %268 = shalt.err (!%p265_p4)
}
   0xb   :  { %s294_s12 = smov 512   ;;  %s295_s13 = smov 32  }
   0xc   :  { %20 = dma.hbm_to_vmem [thread:$0]  %s401_s0, 2560, %s15_s10, [#allocation3], %s294_s12, %s294_s12, %s295_s13  }
   0xd   :  { %289 = dma.done.wait [#allocation3], 2560  }
   0xe   :  { %290 = vsyncadd [#allocation3], 4294964736  ;;  %v296_v0 = vmov 0   ;;  %v102_v1 = vld [vmem:[%s402_s1] sm:$0xff]  ;;  %v103_v2 = vld [vmem:[%s402_s1 + $0x8] sm:$0xff]  ;;  %s297_s0 = smov [#allocation5]  }
   0xf   :  { %232 = vset.pattern.permute.xlu0 %v296_v0  ;;  %v325_v3 = vld [vmem:[#allocation2 + $0x40] sm:$0xff]  ;;  %v327_v4 = vld [vmem:[#allocation2 + $0x48] sm:$0xff]  ;;  %v329_v5 = vld [vmem:[#allocation2 + $0x50] sm:$0xff]  ;;  %s215_s1 = sshll.u32 %s297_s0, 4  ;;  %s216_s1 = int_to_ptr.vmem [resolvable:$true] %s215_s1 }
  0x10   :  { %106 = vperm.xlu0 %232, %v102_v1   ;;  %v331_v6 = vld [vmem:[#allocation2 + $0x58] sm:$0xff]  ;;  %v333_v7 = vld [vmem:[#allocation2 + $0x60] sm:$0xff]  ;;  %v335_v8 = vld [vmem:[#allocation2 + $0x68] sm:$0xff]  ;;  %v130_v14 = vmul.f32 %v325_v3, %v325_v3  ;;  %v131_v15 = vmul.f32 %v327_v4, %v327_v4  ;;  %v132_v19 = vmul.f32 %v329_v5, %v329_v5  ;;  %s269_s20 = scalar_lea.vmem %s216_s1, 2560  ;;  %p274_p6 = scmp.lt.s32.totalorder %s216_s1, %s216_s1 }
  0x11   :  { %v337_v9 = vld [vmem:[#allocation2 + $0x70] sm:$0xff]  ;;  %v339_v10 = vld [vmem:[#allocation2 + $0x78] sm:$0xff]  ;;  %v341_v11 = vld [vmem:[#allocation2 + $0x80] sm:$0xff]  ;;  %v134_v16 = vmul.f32 %v333_v7, %v333_v7  ;;  %v135_v17 = vmul.f32 %v335_v8, %v335_v8  ;;  %v133_v21 = vmul.f32 %v331_v6, %v331_v6  ;;  %p270_p5 = scmp.ne.s32.totalorder %s216_s1, %s269_s20  ;;  %p275_p7 = scmp.lt.s32.totalorder %s269_s20, %s269_s20 }
  0x12   :  { %v343_v12 = vld [vmem:[#allocation2 + $0x88] sm:$0xff]  ;;  %v345_v13 = vld [vmem:[#allocation2 + $0x90] sm:$0xff]  ;;  %v355_v18 = vld [vmem:[#allocation2 + $0x98] sm:$0xff]  ;;  %v136_v20 = vmul.f32 %v337_v9, %v337_v9  ;;  %v137_v22 = vmul.f32 %v339_v10, %v339_v10  ;;  %v138_v23 = vmul.f32 %v341_v11, %v341_v11 }
  0x13   :  { %v139_v24 = vmul.f32 %v343_v12, %v343_v12  ;;  %v140_v25 = vmul.f32 %v345_v13, %v345_v13  ;;  %v141_v26 = vmul.f32 %v355_v18, %v355_v18  ;;  %v142_v27 = vadd.f32 %v134_v16, %v130_v14  ;;  %p276_p8 = por %p275_p7, %p274_p6 }
  0x14   :  { %111 = vperm.xlu0 %232, %v103_v2   ;;  %v150_v28 = vadd.f32 %v135_v17, %v131_v15  ;;  %v158_v29 = vadd.f32 %v136_v20, %v132_v19  ;;  %v166_v32 = vadd.f32 %v137_v22, %v133_v21 }
  0x15   :  { %v143_v30 = vadd.f32 %v142_v27, %v138_v23  ;;  %p277_p9 = pnand %p276_p8, %p270_p5 }
  0x16   :  { %v151_v31 = vadd.f32 %v150_v28, %v139_v24  ;;  %v159_v33 = vadd.f32 %v158_v29, %v140_v25  ;;  %v167_v36 = vadd.f32 %v166_v32, %v141_v26 }
  0x17   :  { %v144_v34 = vrot.slane %v143_v30, 4 }
  0x18   :  { %v152_v35 = vrot.slane %v151_v31, 4  ;;  %v160_v37 = vrot.slane %v159_v33, 4  ;;  %v168_v40 = vrot.slane %v167_v36, 4 }
  0x19   :  { %v145_v38 = vadd.f32 %v144_v34, %v143_v30 }
  0x1a   :  { %v153_v39 = vadd.f32 %v152_v35, %v151_v31  ;;  %v161_v41 = vadd.f32 %v160_v37, %v159_v33  ;;  %v169_v44 = vadd.f32 %v168_v40, %v167_v36 }
  0x1b   :  { %v146_v42 = vrot.slane %v145_v38, 2 }
  0x1c   :  { %v154_v43 = vrot.slane %v153_v39, 2  ;;  %v162_v45 = vrot.slane %v161_v41, 2  ;;  %v170_v48 = vrot.slane %v169_v44, 2 }
  0x1d   :  { %v147_v46 = vadd.f32 %v146_v42, %v145_v38 }
  0x1e   :  { %v155_v47 = vadd.f32 %v154_v43, %v153_v39  ;;  %v163_v49 = vadd.f32 %v162_v45, %v161_v41  ;;  %v171_v52 = vadd.f32 %v170_v48, %v169_v44 }
  0x1f   :  { %v148_v50 = vrot.slane %v147_v46, 1 }
  0x20   :  { %v156_v51 = vrot.slane %v155_v47, 1  ;;  %v164_v53 = vrot.slane %v163_v49, 1  ;;  %v172_v56 = vrot.slane %v171_v52, 1 }
  0x21   :  { %v149_v54 = vadd.f32 %v148_v50, %v147_v46 }
  0x22   :  { %v157_v55 = vadd.f32 %v156_v51, %v155_v47  ;;  %v165_v57 = vadd.f32 %v164_v53, %v163_v49  ;;  %v173_v58 = vadd.f32 %v172_v56, %v171_v52 }
  0x23   :  { %v174_v59 = vmul.f32 0.041666668, %v149_v54 }
  0x24   :  { %v175_v60 = vmul.f32 0.041666668, %v157_v55  ;;  %v176_v61 = vmul.f32 0.041666668, %v165_v57  ;;  %v177_v62 = vmul.f32 0.041666668, %v173_v58 }
  0x25   :  { %v178_v63 = vadd.f32 2e-05, %v174_v59 }
  0x26   :  { %v179_v0 = vadd.f32 2e-05, %v175_v60  ;;  %v180_v1 = vadd.f32 2e-05, %v176_v61  ;;  %v181_v2 = vadd.f32 2e-05, %v177_v62 }
  0x27   :  { %233 = vrsqrt.f32 %v178_v63 }
  0x28   :  { %235 = vrsqrt.f32 %v179_v0 }
  0x29   :  { %237 = vrsqrt.f32 %v180_v1 }
  0x2a   :  { %239 = vrsqrt.f32 %v181_v2 }
  0x34   :  { %v234_v14 = vpop.eup %233 }
  0x35   :  { %v236_v15 = vpop.eup %235  ;;  %v186_v16 = vmul.f32 %v234_v14, %v325_v3  ;;  %v190_v17 = vmul.f32 %v234_v14, %v333_v7  ;;  %v194_v19 = vmul.f32 %v234_v14, %v341_v11  ;;  %v387_v11 = vld [vmem:[#allocation2 + $0x28] sm:$0xff] }
  0x36   :  { %v238_v20 = vpop.eup %237  ;;  %v187_v21 = vmul.f32 %v236_v15, %v327_v4  ;;  %v191_v22 = vmul.f32 %v236_v15, %v335_v8  ;;  %v195_v23 = vmul.f32 %v236_v15, %v343_v12  ;;  %v385_v8 = vld [vmem:[#allocation2 + $0x20] sm:$0xff]  ;;  %v32_v12 = vld [vmem:[#allocation2 + $0x30] sm:$0xff]  ;;  %v51_v30 = vmul.f32 %v387_v11, %v387_v11 }
  0x37   :  { %v240_v24 = vpop.eup %239  ;;  %v188_v25 = vmul.f32 %v238_v20, %v329_v5  ;;  %v192_v26 = vmul.f32 %v238_v20, %v337_v9  ;;  %v196_v27 = vmul.f32 %v238_v20, %v345_v13  ;;  %198 = vst [vmem:[#allocation5 + $0x40] sm:$0xff] %v186_v16  ;;  %202 = vst [vmem:[#allocation5 + $0x60] sm:$0xff] %v190_v17  ;;  %v26_v5 = vld [vmem:[#allocation2] sm:$0xff]  ;;  %v27_v9 = vld [vmem:[#allocation2 + $0x8] sm:$0xff] }
  0x38   :  { %206 = vst [vmem:[#allocation5 + $0x80] sm:$0xff] %v194_v19  ;;  %v189_v3 = vmul.f32 %v240_v24, %v331_v6  ;;  %v193_v7 = vmul.f32 %v240_v24, %v339_v10  ;;  %v197_v4 = vmul.f32 %v240_v24, %v355_v18  ;;  %199 = vst [vmem:[#allocation5 + $0x48] sm:$0xff] %v187_v21  ;;  %v28_v6 = vld [vmem:[#allocation2 + $0x10] sm:$0xff]  ;;  %v29_v10 = vld [vmem:[#allocation2 + $0x18] sm:$0xff] }
  0x39   :  { %203 = vst [vmem:[#allocation5 + $0x68] sm:$0xff] %v191_v22  ;;  %207 = vst [vmem:[#allocation5 + $0x88] sm:$0xff] %v195_v23  ;;  %v33_v13 = vld [vmem:[#allocation2 + $0x38] sm:$0xff]  ;;  %v46_v18 = vmul.f32 %v26_v5, %v26_v5  ;;  %v50_v28 = vmul.f32 %v385_v8, %v385_v8  ;;  %v47_v29 = vmul.f32 %v27_v9, %v27_v9 }
  0x3a   :  { %200 = vst [vmem:[#allocation5 + $0x50] sm:$0xff] %v188_v25  ;;  %204 = vst [vmem:[#allocation5 + $0x70] sm:$0xff] %v192_v26  ;;  %v48_v31 = vmul.f32 %v28_v6, %v28_v6  ;;  %v52_v32 = vmul.f32 %v32_v12, %v32_v12  ;;  %v49_v33 = vmul.f32 %v29_v10, %v29_v10 }
  0x3b   :  { %208 = vst [vmem:[#allocation5 + $0x90] sm:$0xff] %v196_v27  ;;  %201 = vst [vmem:[#allocation5 + $0x58] sm:$0xff] %v189_v3  ;;  %v53_v34 = vmul.f32 %v33_v13, %v33_v13  ;;  %v54_v35 = vadd.f32 %v50_v28, %v46_v18  ;;  %v61_v36 = vadd.f32 %v51_v30, %v47_v29 }
  0x3c   :  { %205 = vst [vmem:[#allocation5 + $0x78] sm:$0xff] %v193_v7  ;;  %209 = vst [vmem:[#allocation5 + $0x98] sm:$0xff] %v197_v4  ;;  %v68_v37 = vadd.f32 %v52_v32, %v48_v31 }
  0x3d   :  { %v75_v38 = vadd.f32 %v53_v34, %v49_v33  ;;  %v55_v39 = vrot.slane %v54_v35, 4  ;;  %v62_v40 = vrot.slane %v61_v36, 4 }
  0x3e   :  { %v69_v41 = vrot.slane %v68_v37, 4 }
  0x3f   :  { %v76_v42 = vrot.slane %v75_v38, 4  ;;  %v56_v43 = vadd.f32 %v55_v39, %v54_v35  ;;  %v63_v44 = vadd.f32 %v62_v40, %v61_v36 }
  0x40   :  { %v70_v45 = vadd.f32 %v69_v41, %v68_v37 }
  0x41   :  { %v77_v46 = vadd.f32 %v76_v42, %v75_v38  ;;  %v57_v47 = vrot.slane %v56_v43, 2  ;;  %v64_v48 = vrot.slane %v63_v44, 2 }
  0x42   :  { %v71_v49 = vrot.slane %v70_v45, 2 }
  0x43   :  { %v78_v50 = vrot.slane %v77_v46, 2  ;;  %v58_v51 = vadd.f32 %v57_v47, %v56_v43  ;;  %v65_v52 = vadd.f32 %v64_v48, %v63_v44 }
  0x44   :  { %v72_v53 = vadd.f32 %v71_v49, %v70_v45 }
  0x45   :  { %v79_v54 = vadd.f32 %v78_v50, %v77_v46  ;;  %v59_v55 = vrot.slane %v58_v51, 1  ;;  %v66_v56 = vrot.slane %v65_v52, 1 }
  0x46   :  { %v73_v57 = vrot.slane %v72_v53, 1 }
  0x47   :  { %v80_v58 = vrot.slane %v79_v54, 1  ;;  %v60_v59 = vadd.f32 %v59_v55, %v58_v51  ;;  %v67_v60 = vadd.f32 %v66_v56, %v65_v52 }
  0x48   :  { %v74_v61 = vadd.f32 %v73_v57, %v72_v53 }
  0x49   :  { %v81_v62 = vadd.f32 %v80_v58, %v79_v54  ;;  %v82_v63 = vmul.f32 0.0625, %v60_v59  ;;  %v83_v0 = vmul.f32 0.0625, %v67_v60 }
  0x4a   :  { %v84_v1 = vmul.f32 0.0625, %v74_v61 }
  0x4b   :  { %v85_v2 = vmul.f32 0.0625, %v81_v62  ;;  %v86_v14 = vadd.f32 2e-05, %v82_v63  ;;  %v87_v15 = vadd.f32 2e-05, %v83_v0 }
  0x4c   :  { %v88_v16 = vadd.f32 2e-05, %v84_v1 }
  0x4d   :  { %v89_v17 = vadd.f32 2e-05, %v85_v2  ;;  %241 = vrsqrt.f32 %v86_v14 }
  0x4e   :  { %243 = vrsqrt.f32 %v87_v15 }
  0x4f   :  { %245 = vrsqrt.f32 %v88_v16 }
  0x50   :  { %247 = vrsqrt.f32 %v89_v17 }
  0x5a   :  { %v242_v19 = vpop.eup %241 }
  0x5b   :  { %v244_v20 = vpop.eup %243  ;;  %v94_v23 = vmul.f32 %v242_v19, %v26_v5  ;;  %v98_v3 = vmul.f32 %v242_v19, %v385_v8 }
  0x5c   :  { %v246_v21 = vpop.eup %245  ;;  %v95_v24 = vmul.f32 %v244_v20, %v27_v9  ;;  %v99_v7 = vmul.f32 %v244_v20, %v387_v11 }
  0x5d   :  { %v248_v22 = vpop.eup %247  ;;  %v96_v25 = vmul.f32 %v246_v21, %v28_v6  ;;  %v100_v4 = vmul.f32 %v246_v21, %v32_v12 }
  0x5e   :  { %v97_v26 = vmul.f32 %v248_v22, %v29_v10  ;;  %v101_v18 = vmul.f32 %v248_v22, %v33_v13 }
  0x8b   :  { %v107_v27 = vpop.permute.xlu0 %106 }
  0x8c   :  { %v114_v28 = vadd.f32 %v107_v27, %v94_v23  ;;  %v115_v29 = vadd.f32 %v107_v27, %v95_v24  ;;  %v116_v30 = vadd.f32 %v107_v27, %v96_v25  ;;  %v117_v31 = vadd.f32 %v107_v27, %v97_v26 }
  0x8e   :  { %122 = vst [vmem:[#allocation5] sm:$0xff] %v114_v28  ;;  %123 = vst [vmem:[#allocation5 + $0x8] sm:$0xff] %v115_v29 }
  0x8f   :  { %124 = vst [vmem:[#allocation5 + $0x10] sm:$0xff] %v116_v30  ;;  %125 = vst [vmem:[#allocation5 + $0x18] sm:$0xff] %v117_v31  ;;  %v112_v5 = vpop.permute.xlu0 %111 }
  0x90   :  { %v118_v9 = vadd.f32 %v112_v5, %v98_v3  ;;  %v119_v6 = vadd.f32 %v112_v5, %v99_v7  ;;  %v120_v10 = vadd.f32 %v112_v5, %v100_v4  ;;  %v121_v32 = vadd.f32 %v112_v5, %v101_v18 }
  0x92   :  { %126 = vst [vmem:[#allocation5 + $0x20] sm:$0xff] %v118_v9  ;;  %127 = vst [vmem:[#allocation5 + $0x28] sm:$0xff] %v119_v6 }
  0x93   :  { %128 = vst [vmem:[#allocation5 + $0x30] sm:$0xff] %v120_v10  ;;  %129 = vst [vmem:[#allocation5 + $0x38] sm:$0xff] %v121_v32 }
  0x94   :  { %280 = shalt.err (!%p277_p9)
}
  0x95   :  { %221 = dma.vmem_to_hbm [thread:$0]  %s216_s1, 2560, %s403_s2, [#allocation4], %s294_s12, %s294_s12, %s295_s13  }
  0x96   :  { %291 = dma.done.wait [#allocation4], 2560  }
  0x97   :  { %292 = vsyncadd [#allocation4], 4294964736 }
  0x98   :  { %225 = vsyncpa [#allocation3], 1 }
  0x99   :  { %226 = vsyncpa [#allocation4], 1 }

</bundles_post_ra>
